<compile_context>
chip_gen: v5e
topology: v5e:2x2
jax: 0.10.0
libtpu: 0.0.40
codegen_flags: <defaults>
</compile_context>

<pallas_src>
import functools

import jax
import jax.numpy as jnp
from jax import lax
from jax.experimental import pallas as pl
from jax.experimental.pallas import tpu as pltpu


def _round_up(a, b):
    return ((a + b - 1) // b) * b


def _vmem_budget_bytes():
    """~75% of physical per-core VMEM; conservative fallback if query fails."""
    try:
        cap = int(pltpu.get_tpu_info().vmem_capacity_bytes)
    except Exception:
        cap = 64 << 20  # safe on every chip (v7x has the smallest VMEM)
    return int(cap * 0.75)


def _linear_kernel(x_ref, w_ref, b_ref, o_ref, acc_ref):
    # x_ref:   (bm, bk) input tile
    # w_ref:   (bn, bk) PyTorch-layout weight tile (num_classes-major)
    # b_ref:   (1, bn)  bias tile (block index invariant along K -> no per-k DMA)
    # o_ref:   (bm, bn) output tile (lane-dense: bn is a multiple of 128)
    # acc_ref: (bm, bn) fp32 VMEM accumulator, persists across the K grid axis
    k = pl.program_id(2)

    @pl.when(k == 0)
    def _():
        acc_ref[...] = jnp.zeros_like(acc_ref)

    # Contract x.K with w.K  ==  x @ W.T  (no transpose materialized in HBM).
    acc_ref[...] += lax.dot_general(
        x_ref[...],
        w_ref[...],
        dimension_numbers=(((1,), (1,)), ((), ())),
        preferred_element_type=jnp.float32,
    )

    @pl.when(k == pl.num_programs(2) - 1)
    def _():
        o_ref[...] = (acc_ref[...] + b_ref[...].astype(jnp.float32)).astype(o_ref.dtype)


@functools.partial(jax.jit, static_argnames=("block_m", "block_n", "block_k"))
def linear_classifier_forward(x, weight, bias, block_m=512, block_n=512, block_k=1024):
    """y = x @ weight.T + bias  (semantics of nn.Linear.forward)."""
    B, D = x.shape
    N, D2 = weight.shape
    assert D == D2, "input_dim mismatch between x and weight"

    itemsize = jnp.dtype(x.dtype).itemsize
    w_itemsize = jnp.dtype(weight.dtype).itemsize
    sublane = {1: 32, 2: 16, 4: 8}.get(itemsize, 8)

    # ---- batch tiling: big tiles, rounded up to the dtype sublane ----------
    bm = _round_up(min(block_m, _round_up(B, sublane)), sublane)
    b_pad = _round_up(B, bm)

    # ---- class tiling: multiples of 128 lanes (dense, unmasked stores) -----
    n128 = _round_up(N, 128)
    bn = min(_round_up(block_n, 128), n128)
    n_pad = _round_up(n128, bn)

    # ---- K (input_dim) tiling: bounds VMEM independent of input_dim --------
    bk0 = _round_up(block_k, 128)
    if D <= bk0:
        bk, d_pad = D, D                 # single K step; full-extent block is legal
    else:
        bk = bk0
        d_pad = _round_up(D, bk)         # zero-padded K contributes nothing

    x_p = x
    if (b_pad, d_pad) != (B, D):
        x_p = jnp.pad(x, ((0, b_pad - B), (0, d_pad - D)))
    w_p = weight
    if (n_pad, d_pad) != (N, D):
        w_p = jnp.pad(weight, ((0, n_pad - N), (0, d_pad - D)))
    b_p = (bias if n_pad == N else jnp.pad(bias, (0, n_pad - N))).reshape(1, n_pad)

    grid = (b_pad // bm, n_pad // bn, d_pad // bk)

    # Double-buffered tiles at their real dtype; fp32 only for the accumulator.
    vmem_est = (
        2 * (bm * bk * itemsize + bn * bk * w_itemsize + bn * itemsize + bm * bn * itemsize)
        + bm * bn * 4
        + (2 << 20)  # Mosaic internal scratch / semaphores headroom
    )
    vmem_limit = int(min(max(vmem_est, 32 << 20), _vmem_budget_bytes()))

    # Weight is re-read once per batch tile (i is the outermost grid axis).
    bytes_accessed = (
        b_pad * d_pad * itemsize
        + grid[0] * n_pad * d_pad * w_itemsize
        + n_pad * itemsize
        + b_pad * n_pad * itemsize
    )

    out = pl.pallas_call(
        _linear_kernel,
        out_shape=jax.ShapeDtypeStruct((b_pad, n_pad), x.dtype),
        grid_spec=pltpu.PrefetchScalarGridSpec(
            num_scalar_prefetch=0,
            grid=grid,
            in_specs=[
                pl.BlockSpec((bm, bk), lambda i, j, k: (i, k)),   # x tile
                pl.BlockSpec((bn, bk), lambda i, j, k: (j, k)),   # weight tile
                pl.BlockSpec((1, bn), lambda i, j, k: (0, j)),    # bias tile
            ],
            out_specs=pl.BlockSpec((bm, bn), lambda i, j, k: (i, j)),
            scratch_shapes=[pltpu.VMEM((bm, bn), jnp.float32)],
        ),
        compiler_params=pltpu.CompilerParams(
            dimension_semantics=("parallel", "parallel", "arbitrary"),
            vmem_limit_bytes=vmem_limit,
        ),
        cost_estimate=pl.CostEstimate(
            flops=2 * b_pad * d_pad * n_pad,
            transcendentals=0,
            bytes_accessed=bytes_accessed,
        ),
    )(x_p, w_p, b_p)

    return out[:B, :N]


if __name__ == "__main__":
    key = jax.random.PRNGKey(0)

    def _make_inputs(kxy, B, input_dim, num_classes):
        kx, kw, kb = jax.random.split(kxy, 3)
        # PyTorch default Linear init: uniform in [-1/sqrt(in), 1/sqrt(in)].
        bound = 1.0 / jnp.sqrt(jnp.float32(input_dim))
        weight = jax.random.uniform(
            kw, (num_classes, input_dim), jnp.float32, minval=-bound, maxval=bound
        )
        bias = jax.random.uniform(
            kb, (num_classes,), jnp.float32, minval=-bound, maxval=bound
        )
        x = jax.random.normal(kx, (B, input_dim), jnp.float32)
        return x, weight, bias

    # Test 1: small shapes consistent with the module (single K step).
    k1, k2 = jax.random.split(key)
    x, weight, bias = _make_inputs(k1, B=8, input_dim=32, num_classes=16)
    y = jax.block_until_ready(linear_classifier_forward(x, weight, bias))
    y_ref = x @ weight.T + bias
    assert y.shape == (8, 16)
    assert jnp.allclose(y, y_ref, atol=1e-5, rtol=1e-5)

    # Test 2: exercise the K-reduction grid axis + zero-padded K (3 K-steps).
    x2, w2, b2 = _make_inputs(k2, B=8, input_dim=288, num_classes=16)
    y2 = jax.block_until_ready(
        linear_classifier_forward(x2, w2, b2, block_k=128)
    )
    y2_ref = x2 @ w2.T + b2
    assert y2.shape == (8, 16)
    assert jnp.allclose(y2, y2_ref, atol=1e-4, rtol=1e-4)

    print("KERNEL_OK")
</pallas_src>

<mosaic_0001>
module attributes {stable_mosaic.version = 11 : i64} {
  func.func @_linear_kernel(%arg0: i32, %arg1: i32, %arg2: i32, %arg3: memref<8x32xf32, #tpu.memory_space<vmem>>, %arg4: memref<128x32xf32, #tpu.memory_space<vmem>>, %arg5: memref<1x128xf32, #tpu.memory_space<vmem>>, %arg6: memref<8x128xf32, #tpu.memory_space<vmem>>, %arg7: memref<8x128xf32, #tpu.memory_space<vmem>>) attributes {dimension_semantics = [#tpu.dimension_semantics<parallel>, #tpu.dimension_semantics<parallel>, #tpu.dimension_semantics<arbitrary>], iteration_bounds = array<i64: 1, 1, 1>, scalar_prefetch = 0 : i64, scratch_operands = 1 : i64, tpu.core_type = #tpu.core_type<tc>, window_params = [{transform_indices = @transform_0, window_bounds = array<i64: 8, 32>}, {transform_indices = @transform_1, window_bounds = array<i64: 128, 32>}, {transform_indices = @transform_2, window_bounds = array<i64: 1, 128>}, {transform_indices = @transform_3, window_bounds = array<i64: 8, 128>}]} {
    %c0_i32 = arith.constant 0 : i32
    %0 = arith.cmpi eq, %arg2, %c0_i32 : i32
    %1 = arith.extui %0 : i1 to i32
    %c0_i32_0 = arith.constant 0 : i32
    %2 = arith.cmpi ne, %1, %c0_i32_0 : i32
    scf.if %2 {
      %cst_10 = arith.constant 0.000000e+00 : f32
      %12 = vector.broadcast %cst_10 : f32 to vector<8x128xf32>
      %c0_11 = arith.constant 0 : index
      %c0_12 = arith.constant 0 : index
      %13 = vector.load %arg7[%c0_11, %c0_12] : memref<8x128xf32, #tpu.memory_space<vmem>>, vector<8x128xf32>
      tpu.vector_store %arg7[%c0_11, %c0_12], %12 {strides = array<i32>} : memref<8x128xf32, #tpu.memory_space<vmem>>, vector<8x128xf32>,
    } else {
    }
    %c0 = arith.constant 0 : index
    %c0_1 = arith.constant 0 : index
    %3 = vector.load %arg7[%c0, %c0_1] : memref<8x128xf32, #tpu.memory_space<vmem>>, vector<8x128xf32>
    %c0_2 = arith.constant 0 : index
    %c0_3 = arith.constant 0 : index
    %4 = vector.load %arg3[%c0_2, %c0_3] : memref<8x32xf32, #tpu.memory_space<vmem>>, vector<8x32xf32>
    %c0_4 = arith.constant 0 : index
    %c0_5 = arith.constant 0 : index
    %5 = vector.load %arg4[%c0_4, %c0_5] : memref<128x32xf32, #tpu.memory_space<vmem>>, vector<128x32xf32>
    %cst = arith.constant dense<0.000000e+00> : vector<8x128xf32>
    %6 = tpu.matmul %4, %5, %cst {dimension_numbers = #tpu.dot_dimension_numbers<[1], [1], [0], [0], [0, 0, 1, 0], [], []>} : vector<8x32xf32>, vector<128x32xf32>, vector<8x128xf32> -> vector<8x128xf32>
    %7 = arith.addf %3, %6 : vector<8x128xf32>
    %c0_6 = arith.constant 0 : index
    %c0_7 = arith.constant 0 : index
    %8 = vector.load %arg7[%c0_6, %c0_7] : memref<8x128xf32, #tpu.memory_space<vmem>>, vector<8x128xf32>
    tpu.vector_store %arg7[%c0_6, %c0_7], %7 {strides = array<i32>} : memref<8x128xf32, #tpu.memory_space<vmem>>, vector<8x128xf32>,
    %c0_i32_8 = arith.constant 0 : i32
    %9 = arith.cmpi eq, %arg2, %c0_i32_8 : i32
    %10 = arith.extui %9 : i1 to i32
    %c0_i32_9 = arith.constant 0 : i32
    %11 = arith.cmpi ne, %10, %c0_i32_9 : i32
    scf.if %11 {
      %c0_10 = arith.constant 0 : index
      %c0_11 = arith.constant 0 : index
      %12 = vector.load %arg7[%c0_10, %c0_11] : memref<8x128xf32, #tpu.memory_space<vmem>>, vector<8x128xf32>
      %c0_12 = arith.constant 0 : index
      %c0_13 = arith.constant 0 : index
      %13 = vector.load %arg5[%c0_12, %c0_13] : memref<1x128xf32, #tpu.memory_space<vmem>>, vector<1x128xf32>
      %14 = vector.broadcast %13 : vector<1x128xf32> to vector<8x128xf32>
      %15 = arith.addf %12, %14 : vector<8x128xf32>
      %c0_14 = arith.constant 0 : index
      %c0_15 = arith.constant 0 : index
      %16 = vector.load %arg6[%c0_14, %c0_15] : memref<8x128xf32, #tpu.memory_space<vmem>>, vector<8x128xf32>
      tpu.vector_store %arg6[%c0_14, %c0_15], %15 {strides = array<i32>} : memref<8x128xf32, #tpu.memory_space<vmem>>, vector<8x128xf32>,
    } else {
    }
    return
  }
  func.func @transform_0(%arg0: i32, %arg1: i32, %arg2: i32) -> (i32, i32) {
    %c0_i32 = arith.constant 0 : i32
    return %arg0, %arg2 : i32, i32
  }
  func.func @transform_1(%arg0: i32, %arg1: i32, %arg2: i32) -> (i32, i32) {
    %c0_i32 = arith.constant 0 : i32
    return %arg1, %arg2 : i32, i32
  }
  func.func @transform_2(%arg0: i32, %arg1: i32, %arg2: i32) -> (i32, i32) {
    %c0_i32 = arith.constant 0 : i32
    %c0_i32_0 = arith.constant 0 : i32
    return %c0_i32, %arg1 : i32, i32
  }
  func.func @transform_3(%arg0: i32, %arg1: i32, %arg2: i32) -> (i32, i32) {
    %c0_i32 = arith.constant 0 : i32
    return %arg0, %arg1 : i32, i32
  }
}

</mosaic_0001>

<bundles_post_ra>
// kernel: linear_classifier_forward.1
= control target key start
LH: loop header
LB: loop body
LE: loop exit
PB: predicated region body
PF: predicated region fallthrough
CT: control target
= control target key end

     0   :  { %vm38_vm0 = vcmask 261120   ;;  %s278_s0 = inlined_call_operand.vmem [shape: f32[8,32], index: 0, kind: input, shape index: {}]   ;;  %s279_s1 = inlined_call_operand.vmem [shape: f32[128,32], index: 1, kind: input, shape index: {}]   ;;  %s280_s2 = inlined_call_operand.vmem [shape: f32[1,128], index: 2, kind: input, shape index: {}]   ;;  %s281_s3 = inlined_call_operand.hbm [shape: f32[8,128], index: 3, kind: output, shape index: {}]  }
   0x1   :  { %v37_v0 = vld [vmem:[%s279_s1 + $0x78] sm:$0xff]  ;;  %v36_v1 = vld [vmem:[%s279_s1 + $0x70] sm:$0xff] }
   0x2   :  { %138 = vmatpush.xpose.msk.msra.mxu0 %vm38_vm0, %v37_v0 }
   0x3   :  { %8 = vsyncpa [#allocation4], 0  ;;  %v35_v2 = vld [vmem:[%s279_s1 + $0x68] sm:$0xff]  ;;  %v34_v3 = vld [vmem:[%s279_s1 + $0x60] sm:$0xff]  ;;  %s183_s21 = smov [#allocation3]   ;;  %s129_s25 = sshll.u32 %s281_s3, 4  ;;  %s130_s25 = int_to_ptr.hbm [resolvable:$true] %s129_s25 }
   0x4   :  { %v33_v4 = vld [vmem:[%s279_s1 + $0x58] sm:$0xff]  ;;  %v32_v5 = vld [vmem:[%s279_s1 + $0x50] sm:$0xff]  ;;  %v31_v6 = vld [vmem:[%s279_s1 + $0x48] sm:$0xff]  ;;  %s127_s22 = sshll.u32 %s183_s21, 4  ;;  %s128_s22 = int_to_ptr.vmem [resolvable:$true] %s127_s22 }
   0x5   :  { %v30_v7 = vld [vmem:[%s279_s1 + $0x40] sm:$0xff]  ;;  %v29_v8 = vld [vmem:[%s279_s1 + $0x38] sm:$0xff]  ;;  %v28_v9 = vld [vmem:[%s279_s1 + $0x30] sm:$0xff] }
   0x6   :  { %139 = vmatpush.xpose.msk.msra.mxu0 %vm38_vm0, %v36_v1  ;;  %v27_v10 = vld [vmem:[%s279_s1 + $0x28] sm:$0xff]  ;;  %v26_v11 = vld [vmem:[%s279_s1 + $0x20] sm:$0xff]  ;;  %v25_v12 = vld [vmem:[%s279_s1 + $0x18] sm:$0xff] }
   0x7   :  { %v24_v13 = vld [vmem:[%s279_s1 + $0x10] sm:$0xff]  ;;  %v23_v14 = vld [vmem:[%s279_s1 + $0x8] sm:$0xff]  ;;  %v22_v15 = vld [vmem:[%s279_s1] sm:$0xff] }
   0x8   :  { %v21_v16 = vld [vmem:[%s278_s0] sm:$0xff] }
   0x9   :  { %v156_v17 = vld [vmem:[%s280_s2] ss:$0 sm:$0xff] }
   0xa   :  { %140 = vmatpush.xpose.msk.msra.mxu0 %vm38_vm0, %v35_v2 }
   0xe   :  { %141 = vmatpush.xpose.msk.msra.mxu0 %vm38_vm0, %v34_v3 }
  0x12   :  { %142 = vmatpush.xpose.msk.msra.mxu0 %vm38_vm0, %v33_v4 }
  0x16   :  { %143 = vmatpush.xpose.msk.msra.mxu0 %vm38_vm0, %v32_v5 }
  0x1a   :  { %144 = vmatpush.xpose.msk.msra.mxu0 %vm38_vm0, %v31_v6 }
  0x1e   :  { %145 = vmatpush.xpose.msk.msra.mxu0 %vm38_vm0, %v30_v7 }
  0x22   :  { %146 = vmatpush.xpose.msk.msra.mxu0 %vm38_vm0, %v29_v8 }
  0x26   :  { %147 = vmatpush.xpose.msk.msra.mxu0 %vm38_vm0, %v28_v9 }
  0x2a   :  { %148 = vmatpush.xpose.msk.msra.mxu0 %vm38_vm0, %v27_v10 }
  0x2e   :  { %149 = vmatpush.xpose.msk.msra.mxu0 %vm38_vm0, %v26_v11 }
  0x32   :  { %150 = vmatpush.xpose.msk.msra.mxu0 %vm38_vm0, %v25_v12 }
  0x36   :  { %151 = vmatpush.xpose.msk.msra.mxu0 %vm38_vm0, %v24_v13 }
  0x3a   :  { %152 = vmatpush.xpose.msk.msra.mxu0 %vm38_vm0, %v23_v14 }
  0x3e   :  { %153 = vmatpush.xpose.msk.msra.mxu0 %vm38_vm0, %v22_v15 }
  0x41   :  { %154 = vmatmul.msk.f32.vlgmr.msra.gmra.mxu0 %vm38_vm0, %v21_v16 }
  0xbe   :  { %v107_v18 = vpop.f32.mrf.mxu0 }
  0xbf   :  { %v120_v19 = vadd.f32 %v156_v17, %v107_v18 }
  0xc1   :  { %121 = vst [vmem:[#allocation3] sm:$0xff] %v120_v19 }
  0xc2   :  { %132 = dma.vmem_to_hbm [thread:$0]  %s128_s22, 128, %s130_s25, [#allocation4]  }
  0xc3   :  { %181 = dma.done.wait [#allocation4], 128  }
  0xc4   :  { %182 = vsyncadd [#allocation4], 4294967168 }
  0xc5   :  { %137 = vsyncpa [#allocation4], 1 }

</bundles_post_ra>
